<compile_context>
chip_gen: v5e
topology: v5e:2x2
jax: 0.10.0
libtpu: 0.0.40
codegen_flags: <defaults>
</compile_context>

<pallas_src>
import functools

import jax
import jax.numpy as jnp
from jax.experimental import pallas as pl
from jax.experimental.pallas import tpu as pltpu


def _round_up(a: int, b: int) -> int:
    return ((a + b - 1) // b) * b


def _matmul_kernel(x_ref, w_ref, o_ref):
    # Row-tile of x times an N-panel of the weight on the MXU, f32 accumulation.
    o_ref[...] = jnp.dot(
        x_ref[...], w_ref[...], preferred_element_type=jnp.float32
    ).astype(o_ref.dtype)


@functools.partial(
    jax.jit, static_argnames=("compute_dtype", "tm_max", "tn_max")
)
def weight_matrix_forward(x, weight, *, compute_dtype=None, tm_max=512, tn_max=256):
    """Pallas implementation of WeightMatrix.forward: x @ weight.

    x:      (..., D)   any leading batch dims
    weight: (D, D)
    compute_dtype: optional operand dtype (e.g. jnp.bfloat16 on v6e/v7x);
                   accumulation is always f32, output keeps x.dtype.
    """
    orig_shape = x.shape
    D = orig_shape[-1]
    assert weight.shape == (D, D)
    assert tn_max % 128 == 0

    out_dtype = x.dtype
    x2 = x.reshape(-1, D)
    w = weight
    if compute_dtype is not None:
        x2 = x2.astype(compute_dtype)
        w = w.astype(compute_dtype)
    itemsize = x2.dtype.itemsize

    M = x2.shape[0]

    # Column tile: multiple of 128 if D allows, otherwise the full width.
    tn = min(tn_max, D) if D % 128 == 0 else D

    # Row tile: biggest multiple of 8 up to tm_max that keeps the
    # double-buffered working set well inside a 64 MiB (v7x) VMEM budget.
    tm = min(tm_max, _round_up(M, 8))
    vmem_budget = 48 * 1024 * 1024
    while tm > 8 and 2 * (tm * D + D * tn + tm * tn) * itemsize > vmem_budget:
        tm = max(8, _round_up(tm // 2, 8))

    # Pad rows to a multiple of the row tile (zeros do not affect the matmul).
    M_pad = _round_up(M, tm)
    if M_pad != M:
        x2 = jnp.pad(x2, ((0, M_pad - M), (0, 0)))

    grid = (M_pad // tm, D // tn)

    cost = pl.CostEstimate(
        flops=2 * M_pad * D * D,
        transcendentals=0,
        bytes_accessed=itemsize * (M_pad * D + D * D)
        + out_dtype.itemsize * M_pad * D,
    )

    out = pl.pallas_call(
        _matmul_kernel,
        out_shape=jax.ShapeDtypeStruct((M_pad, D), out_dtype),
        grid_spec=pltpu.PrefetchScalarGridSpec(
            num_scalar_prefetch=0,
            grid=grid,
            in_specs=[
                # x row tile: (tm, D); tm multiple of 8, D is the full last dim.
                pl.BlockSpec((tm, D), lambda i, j: (i, 0)),
                # weight N-panel: (D, tn); tn multiple of 128 or == D.
                pl.BlockSpec((D, tn), lambda i, j: (0, j)),
            ],
            out_specs=pl.BlockSpec((tm, tn), lambda i, j: (i, j)),
        ),
        compiler_params=pltpu.CompilerParams(
            dimension_semantics=("parallel", "parallel"),
            vmem_limit_bytes=64 * 1024 * 1024,
        ),
        cost_estimate=cost,
    )(x2, w)

    out = out[:M]
    return out.reshape(orig_shape)


def init_weight(key, joint_latent_dim, dtype=jnp.float32):
    """kaiming_normal_ equivalent: fan_in = D, gain = sqrt(2) => std = sqrt(2/D)."""
    std = jnp.sqrt(2.0 / joint_latent_dim)
    return (std * jax.random.normal(
        key, (joint_latent_dim, joint_latent_dim), dtype=jnp.float32
    )).astype(dtype)


def fnorm(weight):
    # Frobenius norm of the weight (glue op, plain JAX).
    return jnp.sqrt(jnp.sum(weight * weight))


if __name__ == "__main__":
    key = jax.random.PRNGKey(0)
    kx, kw, kx2, kw2 = jax.random.split(key, 4)

    # --- Small demo consistent with the module: batch=2, seq=8, hidden=32 ---
    D = 32
    x = jax.random.normal(kx, (2, 8, D), dtype=jnp.float32)
    w = init_weight(kw, D)

    out = jax.block_until_ready(weight_matrix_forward(x, w))
    ref = jnp.matmul(x, w)
    assert out.shape == x.shape
    assert jnp.allclose(out, ref, atol=1e-5, rtol=1e-5), "mismatch (small, f32)"

    # --- Larger case: exercises N-tiling (D % 128 == 0) and row padding ---
    D2, M2 = 256, 520  # 520 is not a multiple of the row tile -> padded path
    xb = jax.random.normal(kx2, (M2, D2), dtype=jnp.float32)
    wb = init_weight(kw2, D2)

    outb = jax.block_until_ready(weight_matrix_forward(xb, wb))
    refb = xb @ wb
    assert outb.shape == (M2, D2)
    assert jnp.allclose(outb, refb, atol=1e-4, rtol=1e-4), "mismatch (tiled, f32)"

    # bf16 operands with f32 accumulation (v6e/v7x fast path).
    outb16 = jax.block_until_ready(
        weight_matrix_forward(xb, wb, compute_dtype=jnp.bfloat16)
    )
    assert jnp.allclose(outb16, refb, atol=5e-2, rtol=5e-2), "mismatch (bf16)"

    # Also exercise fnorm (module API, plain JAX glue).
    _ = jax.block_until_ready(fnorm(w))

    print("KERNEL_OK")
</pallas_src>

<mosaic_0001>
module attributes {stable_mosaic.version = 11 : i64} {
  func.func @_matmul_kernel(%arg0: i32, %arg1: i32, %arg2: memref<16x32xf32, #tpu.memory_space<vmem>>, %arg3: memref<32x32xf32, #tpu.memory_space<vmem>>, %arg4: memref<16x32xf32, #tpu.memory_space<vmem>>) attributes {dimension_semantics = [#tpu.dimension_semantics<parallel>, #tpu.dimension_semantics<parallel>], iteration_bounds = array<i64: 1, 1>, scalar_prefetch = 0 : i64, scratch_operands = 0 : i64, tpu.core_type = #tpu.core_type<tc>, window_params = [{transform_indices = @transform_0, window_bounds = array<i64: 16, 32>}, {transform_indices = @transform_1, window_bounds = array<i64: 32, 32>}, {transform_indices = @transform_2, window_bounds = array<i64: 16, 32>}]} {
    %c0 = arith.constant 0 : index
    %c0_0 = arith.constant 0 : index
    %0 = vector.load %arg2[%c0, %c0_0] : memref<16x32xf32, #tpu.memory_space<vmem>>, vector<16x32xf32>
    %c0_1 = arith.constant 0 : index
    %c0_2 = arith.constant 0 : index
    %1 = vector.load %arg3[%c0_1, %c0_2] : memref<32x32xf32, #tpu.memory_space<vmem>>, vector<32x32xf32>
    %cst = arith.constant dense<0.000000e+00> : vector<16x32xf32>
    %2 = tpu.matmul %0, %1, %cst {dimension_numbers = #tpu.dot_dimension_numbers<[1], [0], [0], [1], [0, 0, 1, 1], [], []>} : vector<16x32xf32>, vector<32x32xf32>, vector<16x32xf32> -> vector<16x32xf32>
    %c0_3 = arith.constant 0 : index
    %c0_4 = arith.constant 0 : index
    %3 = vector.load %arg4[%c0_3, %c0_4] : memref<16x32xf32, #tpu.memory_space<vmem>>, vector<16x32xf32>
    tpu.vector_store %arg4[%c0_3, %c0_4], %2 {strides = array<i32>} : memref<16x32xf32, #tpu.memory_space<vmem>>, vector<16x32xf32>,
    return
  }
  func.func @transform_0(%arg0: i32, %arg1: i32) -> (i32, i32) {
    %c0_i32 = arith.constant 0 : i32
    %c0_i32_0 = arith.constant 0 : i32
    return %arg0, %c0_i32 : i32, i32
  }
  func.func @transform_1(%arg0: i32, %arg1: i32) -> (i32, i32) {
    %c0_i32 = arith.constant 0 : i32
    %c0_i32_0 = arith.constant 0 : i32
    return %c0_i32, %arg1 : i32, i32
  }
  func.func @transform_2(%arg0: i32, %arg1: i32) -> (i32, i32) {
    %c0_i32 = arith.constant 0 : i32
    return %arg0, %arg1 : i32, i32
  }
}

</mosaic_0001>

<bundles_post_ra>
// kernel: weight_matrix_forward.1
= control target key start
LH: loop header
LB: loop body
LE: loop exit
PB: predicated region body
PF: predicated region fallthrough
CT: control target
= control target key end

     0   :  { %7 = vsyncpa [#allocation3], 0  ;;  %s229_s0 = inlined_call_operand.hbm [shape: f32[16,32], index: 0, kind: input, shape index: {}]   ;;  %s230_s1 = inlined_call_operand.hbm [shape: f32[32,32], index: 1, kind: input, shape index: {}]   ;;  %s231_s2 = inlined_call_operand.hbm [shape: f32[16,32], index: 2, kind: output, shape index: {}]  }
   0x1   :  { %8 = vsyncpa [#allocation6], 0 }
   0x2   :  { %9 = vsyncpa [#allocation4], 0  ;;  %s14_s11 = sshll.u32 %s229_s0, 4  ;;  %s191_s12 = smov [#allocation2]   ;;  %s15_s11 = int_to_ptr.hbm [resolvable:$true] %s14_s11 }
   0x3   :  { %s16_s13 = sshll.u32 %s191_s12, 4  ;;  %s27_s16 = sshll.u32 %s230_s1, 4  ;;  %s17_s13 = int_to_ptr.vmem [resolvable:$true] %s16_s13  ;;  %s28_s16 = int_to_ptr.hbm [resolvable:$true] %s27_s16 }
   0x4   :  { %s192_s17 = smov 128   ;;  %s193_s18 = smov 8  }
   0x5   :  { %22 = dma.hbm_to_vmem [thread:$0]  %s15_s11, 256, %s17_s13, [#allocation3], %s192_s17, %s192_s17, %s193_s18  }
   0x6   :  { %s194_s19 = smov [#allocation5]  }
   0x7   :  { %s29_s20 = sshll.u32 %s194_s19, 4  ;;  %s30_s20 = int_to_ptr.vmem [resolvable:$true] %s29_s20 }
   0x8   :  { %35 = dma.hbm_to_vmem [thread:$0]  %s28_s16, 512, %s30_s20, [#allocation6], %s192_s17, %s192_s17, %s193_s18  }
   0x9   :  { %185 = dma.done.wait [#allocation3], 256  }
   0xa   :  { %186 = vsyncadd [#allocation3], 4294967040 }
   0xb   :  { %187 = dma.done.wait [#allocation6], 512  }
   0xc   :  { %188 = vsyncadd [#allocation6], 4294966784  ;;  %v49_v0 = vld [vmem:[#allocation5 + $0x18] sm:$0xff]  ;;  %v48_v1 = vld [vmem:[#allocation5 + $0x10] sm:$0xff]  ;;  %vm50_vm0 = vcmask 261120   ;;  %s195_s0 = smov [#allocation7]  }
   0xd   :  { %69 = vmatpush.msra.mxu0 %v49_v0  ;;  %104 = vmatpush.msra.mxu1 %v49_v0  ;;  %v47_v2 = vld [vmem:[#allocation5 + $0x8] sm:$0xff]  ;;  %v46_v3 = vld [vmem:[#allocation5] sm:$0xff]  ;;  %v44_v4 = vld [vmem:[#allocation2] sm:$0xff]  ;;  %s86_s1 = sshll.u32 %s195_s0, 4  ;;  %s88_s23 = sshll.u32 %s231_s2, 4  ;;  %s87_s1 = int_to_ptr.vmem [resolvable:$true] %s86_s1  ;;  %s89_s23 = int_to_ptr.hbm [resolvable:$true] %s88_s23 }
   0xe   :  { %v45_v5 = vld [vmem:[#allocation2 + $0x8] sm:$0xff] }
   0xf   :  { %70 = vmatpush.msra.mxu0 %v48_v1  ;;  %105 = vmatpush.msra.mxu1 %v48_v1 }
  0x11   :  { %71 = vmatpush.msra.mxu0 %v47_v2  ;;  %106 = vmatpush.msra.mxu1 %v47_v2 }
  0x13   :  { %72 = vmatpush.msra.mxu0 %v46_v3  ;;  %107 = vmatpush.msra.mxu1 %v46_v3 }
  0x14   :  { %102 = vmatmul.msk.f32.vlgmr.msra.gmra.mxu0 %vm50_vm0, %v44_v4  ;;  %103 = vmatmul.msk.f32.vlgmr.msra.gmra.mxu1 %vm50_vm0, %v45_v5 }
  0x91   :  { %v74_v6 = vpop.f32.mrf.mxu0  ;;  %v77_v7 = vpop.f32.mrf.mxu1 }
  0x92   :  { %80 = vst.msk [vmem:[#allocation7] sm:$0xff] %vm50_vm0, %v74_v6 }
  0x93   :  { %81 = vst.msk [vmem:[#allocation7 + $0x8] sm:$0xff] %vm50_vm0, %v77_v7 }
  0x94   :  { %94 = dma.vmem_to_hbm [thread:$0]  %s87_s1, 256, %s89_s23, [#allocation4], %s192_s17, %s192_s17, %s193_s18  }
  0x95   :  { %189 = dma.done.wait [#allocation4], 256  }
  0x96   :  { %190 = vsyncadd [#allocation4], 4294967040 }
  0x97   :  { %99 = vsyncpa [#allocation3], 1 }
  0x98   :  { %100 = vsyncpa [#allocation6], 1 }
  0x99   :  { %101 = vsyncpa [#allocation4], 1 }

</bundles_post_ra>
